<compile_context>
chip_gen: v5e
topology: v5e:2x2
jax: 0.10.0
libtpu: 0.0.40
codegen_flags: <defaults>
</compile_context>

<pallas_src>
import jax
import jax.numpy as jnp
import numpy as np
from jax import lax
from jax.experimental import pallas as pl
from jax.experimental.pallas import tpu as pltpu


# -----------------------------------------------------------------------------
# Kernel.
# -----------------------------------------------------------------------------
def make_wavenet_kernel(R, S, dilations, num_stacks, B, L):
    BL = B * L

    def kernel(x_ref, w_in_ref, wd_ref, wp_ref, w2_ref, w34_ref, out_ref):
        # ---- hoisted lane masks (shared by every stack / layer) --------------
        lane = jax.lax.broadcasted_iota(jnp.int32, (1, BL), 1) % L  # pos in seq
        masks = {d: (lane >= d, lane < (L - d)) for d in sorted({1, *dilations})}

        def tap_prev(x, d):  # out[:, l] = x[:, l-d], zero-padded per sequence
            return jnp.where(masks[d][0], pltpu.roll(x, d, axis=1), 0.0)

        def tap_next(x, d):  # out[:, l] = x[:, l+d], zero-padded per sequence
            return jnp.where(masks[d][1], pltpu.roll(x, (BL - d) % BL, axis=1), 0.0)

        def conv_k3(x, w_flat, d):
            # x: (Cin, BL); w_flat: (Cout, 3*Cin) with tap-major columns.
            x3 = jnp.concatenate([tap_prev(x, d), x, tap_next(x, d)], axis=0)
            return jnp.dot(w_flat, x3, preferred_element_type=jnp.float32)

        # ---- input conv (Cin = 1): VPU broadcast MAC, no MXU -----------------
        x = x_ref[...]                      # (1, BL)
        w_in = w_in_ref[...]                # (R, 3) — taps along columns
        h = (w_in[:, 0:1] * tap_prev(x, 1)
             + w_in[:, 1:2] * x
             + w_in[:, 2:3] * tap_next(x, 1))             # (R, BL)

        skip_sum = jnp.zeros((S, BL), jnp.float32)

        # Same ModuleList reused every stack (weights shared across stacks).
        for _ in range(num_stacks):
            for i, d in enumerate(dilations):
                wd_i = wd_ref[i]                           # (2R, 3R)  read at use
                wp_i = wp_ref[i]                           # (R+S, R)
                g = conv_k3(h, wd_i, d)                    # (2R, BL)  one MXU push
                z = jnp.tanh(g[:R]) * jax.nn.sigmoid(g[R:])           # gated unit
                y = jnp.dot(wp_i, z, preferred_element_type=jnp.float32)  # (R+S, BL)
                h = y[:R] + h                              # residual
                skip_sum = skip_sum + y[R:]                # skip accumulation

        a = jnp.maximum(skip_sum, 0.0)                     # ReLU
        a = jnp.maximum(conv_k3(a, w2_ref[...], 1), 0.0)   # conv2 + ReLU
        speech = conv_k3(a, w34_ref[...], 1)               # fused conv3∘conv4 -> (1, BL)
        out_ref[...] = speech.astype(out_ref.dtype)

    return kernel


# -----------------------------------------------------------------------------
# Wrapper: weight re-layout / fusion + pallas_call plumbing.
# -----------------------------------------------------------------------------
def _flatten_k3(w):
    # PyTorch (Cout, Cin, 3) -> (Cout, 3*Cin), tap-major columns [k0 | k1 | k2].
    return jnp.concatenate([w[:, :, 0], w[:, :, 1], w[:, :, 2]], axis=1)


def denoising_wavenet_pallas(x, torch_params, config, dilations):
    B, _, L = x.shape
    m = config["model"]
    R = m["filters"]["depths"]["res"]
    S = m["filters"]["depths"]["skip"]
    num_stacks = m["num_stacks"]
    assert m["filters"]["lengths"]["res"] == 3, "kernel assumes filter length 3"
    assert S == R, "PyTorch module feeds the skip sum into Conv1d(res, ...)"

    n_layers = len(dilations)
    w_in = torch_params["conv1"][:, 0, :]                                      # (R, 3)
    wd_stack = jnp.stack([_flatten_k3(torch_params["dil"][i])
                          for i in range(n_layers)])                           # (n, 2R, 3R)
    wp_stack = jnp.stack([torch_params["pw"][i][:, :, 0]
                          for i in range(n_layers)])                           # (n, R+S, R)
    w2_flat = _flatten_k3(torch_params["conv2"])                               # (F0, 3R)
    # Exact fold of the 1x1 conv4 into conv3 (both linear, no nonlinearity between).
    w34 = jnp.einsum("of,fik->oik",
                     torch_params["conv4"][:, :, 0], torch_params["conv3"])    # (1, F0, 3)
    w34_flat = _flatten_k3(w34)                                                # (1, 3*F0)

    # Pack the batch into the lane dimension: (B, 1, L) -> (1, B*L), batch-major.
    x_flat = x[:, 0, :].reshape(1, B * L)

    kernel = make_wavenet_kernel(R, S, dilations, num_stacks, B, L)

    # Single invocation (no grid): the whole problem is a few hundred KB and fits
    # comfortably in VMEM on v5e/v6e/v7x; all inputs land as full VMEM blocks.
    # TODO(synk): for large B, split batch groups over a "parallel" grid axis
    # (>= 2) so both v7x TensorCores are used; not worthwhile at B=2.
    out = pl.pallas_call(
        kernel,
        out_shape=jax.ShapeDtypeStruct((1, B * L), jnp.float32),
    )(x_flat, w_in, wd_stack, wp_stack, w2_flat, w34_flat)
    return out.reshape(B, L)


# -----------------------------------------------------------------------------
# Pure-JAX reference (mirrors the PyTorch forward exactly) for verification.
# -----------------------------------------------------------------------------
def _torch_conv1d(x, w, dilation=1, padding=0):
    return lax.conv_general_dilated(
        x, w, window_strides=(1,), padding=[(padding, padding)],
        rhs_dilation=(dilation,), dimension_numbers=("NCH", "OIH", "NCH"))


def reference_forward(x, p, config, dilations):
    m = config["model"]
    R = m["filters"]["depths"]["res"]
    num_stacks = m["num_stacks"]
    h = _torch_conv1d(x, p["conv1"], 1, 1)
    skips = []
    for _ in range(num_stacks):
        for i, d in enumerate(dilations):
            g = _torch_conv1d(h, p["dil"][i], d, d)
            z = jnp.tanh(g[:, :R]) * jax.nn.sigmoid(g[:, R:])
            y = _torch_conv1d(z, p["pw"][i], 1, 0)
            h = y[:, :R] + h
            skips.append(y[:, R:])
    out = jax.nn.relu(jnp.stack(skips, axis=0).sum(axis=0))
    out = jax.nn.relu(_torch_conv1d(out, p["conv2"], 1, 1))
    out = _torch_conv1d(out, p["conv3"], 1, 1)
    out = _torch_conv1d(out, p["conv4"], 1, 0)
    return out[:, 0]  # squeeze channel dim -> (B, L)


# -----------------------------------------------------------------------------
# Module hyper-parameter bookkeeping (mirrors DenoisingWavenet.__init__).
# -----------------------------------------------------------------------------
def compute_receptive_field_length(stacks, dilations, filter_length, target_field_length):
    half = (filter_length - 1) / 2.0
    length = 2.0 * sum(d * half for d in dilations)
    length = stacks * length
    return int(length + target_field_length)


if __name__ == "__main__":
    config = {
        "model": {
            "num_stacks": 2,
            "dilations": 1,  # int -> dilations = [2**0, 2**1] = [1, 2]
            "filters": {
                "depths": {"res": 8, "skip": 8, "final": [8, 8]},
                "lengths": {"res": 3, "final": [3, 3]},
            },
            "target_field_length": 116,
            "target_padding": 0,
        }
    }
    m = config["model"]
    dilations = [2 ** i for i in range(0, m["dilations"] + 1)]
    rfl = compute_receptive_field_length(m["num_stacks"], dilations,
                                         m["filters"]["lengths"]["res"], 1)
    target_field_length = m["target_field_length"]
    input_length = int(rfl + (target_field_length - 1))   # = 128 here

    R = m["filters"]["depths"]["res"]
    S = m["filters"]["depths"]["skip"]
    F0, F1 = m["filters"]["depths"]["final"]
    B, L = 2, input_length

    # Deterministic synthetic parameters in PyTorch (Cout, Cin, K) layout.
    key = jax.random.PRNGKey(0)
    keys = jax.random.split(key, 8 + 2 * len(dilations))
    kit = iter(keys)
    scale = 0.1
    torch_params = {
        "conv1": scale * jax.random.normal(next(kit), (R, 1, 3), jnp.float32),
        "dil": [scale * jax.random.normal(next(kit), (2 * R, R, 3), jnp.float32)
                for _ in dilations],
        "pw": [scale * jax.random.normal(next(kit), (R + S, R, 1), jnp.float32)
               for _ in dilations],
        "conv2": scale * jax.random.normal(next(kit), (F0, R, 3), jnp.float32),
        "conv3": scale * jax.random.normal(next(kit), (F1, F0, 3), jnp.float32),
        "conv4": scale * jax.random.normal(next(kit), (1, F1, 1), jnp.float32),
    }

    x = jax.random.normal(next(kit), (B, 1, L), jnp.float32)

    out = denoising_wavenet_pallas(x, torch_params, config, dilations)
    out = jax.block_until_ready(out)

    ref = jax.block_until_ready(reference_forward(x, torch_params, config, dilations))
    assert out.shape == (B, L), out.shape
    np.testing.assert_allclose(np.asarray(out), np.asarray(ref), rtol=1e-4, atol=1e-4)

    # TODO(synk): get_*_indices / get_condition_input_length are pure Python
    # index bookkeeping unused by forward(), so they are not ported to the kernel.
    print("KERNEL_OK")
</pallas_src>

<mosaic_0001>
module attributes {stable_mosaic.version = 11 : i64} {
  func.func @kernel(%arg0: memref<1x256xf32, #tpu.memory_space<vmem>>, %arg1: memref<8x3xf32, #tpu.memory_space<vmem>>, %arg2: memref<2x16x24xf32, #tpu.memory_space<vmem>>, %arg3: memref<2x16x8xf32, #tpu.memory_space<vmem>>, %arg4: memref<8x24xf32, #tpu.memory_space<vmem>>, %arg5: memref<1x24xf32, #tpu.memory_space<vmem>>, %arg6: memref<1x256xf32, #tpu.memory_space<vmem>>) attributes {dimension_semantics = [], scalar_prefetch = 0 : i64, scratch_operands = 0 : i64, tpu.core_type = #tpu.core_type<tc>} {
    %0 = tpu.iota {dimensions = array<i32: 1>} : vector<1x256xi32>
    %c128_i32 = arith.constant 128 : i32
    %c0_i32 = arith.constant 0 : i32
    %1 = arith.cmpi eq, %c128_i32, %c0_i32 : i32
    %c1_i32 = arith.constant 1 : i32
    %2 = arith.select %1, %c1_i32, %c128_i32 : i32
    %3 = vector.broadcast %2 : i32 to vector<1x256xi32>
    %4 = arith.remsi %0, %3 : vector<1x256xi32>
    %c0_i32_0 = arith.constant 0 : i32
    %5 = vector.broadcast %c0_i32_0 : i32 to vector<1x256xi32>
    %6 = arith.cmpi ne, %4, %5 : vector<1x256xi32>
    %c0_i32_1 = arith.constant 0 : i32
    %7 = vector.broadcast %c0_i32_1 : i32 to vector<1x256xi32>
    %8 = arith.cmpi slt, %4, %7 : vector<1x256xi32>
    %c0_i32_2 = arith.constant 0 : i32
    %9 = arith.cmpi slt, %2, %c0_i32_2 : i32
    %10 = vector.broadcast %9 : i1 to vector<1x256xi1>
    %11 = vector.broadcast %10 : vector<1x256xi1> to vector<1x256xi1>
    %12 = arith.xori %8, %11 : vector<1x256xi1>
    %13 = arith.andi %12, %6 : vector<1x256xi1>
    %14 = vector.broadcast %2 : i32 to vector<1x256xi32>
    %15 = arith.addi %4, %14 : vector<1x256xi32>
    %16 = arith.select %13, %15, %4 : vector<1x256xi1>, vector<1x256xi32>
    %c1_i32_3 = arith.constant 1 : i32
    %17 = vector.broadcast %c1_i32_3 : i32 to vector<1x256xi32>
    %18 = arith.cmpi sge, %16, %17 : vector<1x256xi32>
    %c127_i32 = arith.constant 127 : i32
    %19 = vector.broadcast %c127_i32 : i32 to vector<1x256xi32>
    %20 = arith.cmpi slt, %16, %19 : vector<1x256xi32>
    %c2_i32 = arith.constant 2 : i32
    %21 = vector.broadcast %c2_i32 : i32 to vector<1x256xi32>
    %22 = arith.cmpi sge, %16, %21 : vector<1x256xi32>
    %c126_i32 = arith.constant 126 : i32
    %23 = vector.broadcast %c126_i32 : i32 to vector<1x256xi32>
    %24 = arith.cmpi slt, %16, %23 : vector<1x256xi32>
    %c0 = arith.constant 0 : index
    %c0_4 = arith.constant 0 : index
    %25 = vector.load %arg0[%c0, %c0_4] : memref<1x256xf32, #tpu.memory_space<vmem>>, vector<1x256xf32>
    %c0_5 = arith.constant 0 : index
    %c0_6 = arith.constant 0 : index
    %26 = vector.load %arg1[%c0_5, %c0_6] : memref<8x3xf32, #tpu.memory_space<vmem>>, vector<8x3xf32>
    %27 = vector.extract_strided_slice %26 {offsets = [0, 0], sizes = [8, 1], strides = [1, 1]} : vector<8x3xf32> to vector<8x1xf32>
    %c1_i32_7 = arith.constant 1 : i32
    %28 = tpu.dynamic_rotate %25 by %c1_i32_7 dim 1 : vector<1x256xf32>, i32 -> vector<1x256xf32>
    %cst = arith.constant 0.000000e+00 : f32
    %29 = vector.broadcast %cst : f32 to vector<1x256xf32>
    %30 = arith.select %18, %28, %29 : vector<1x256xi1>, vector<1x256xf32>
    %31 = vector.broadcast %27 : vector<8x1xf32> to vector<8x256xf32>
    %32 = vector.broadcast %30 : vector<1x256xf32> to vector<8x256xf32>
    %33 = arith.mulf %31, %32 : vector<8x256xf32>
    %34 = vector.extract_strided_slice %26 {offsets = [0, 1], sizes = [8, 1], strides = [1, 1]} : vector<8x3xf32> to vector<8x1xf32>
    %35 = vector.broadcast %34 : vector<8x1xf32> to vector<8x256xf32>
    %36 = vector.broadcast %25 : vector<1x256xf32> to vector<8x256xf32>
    %37 = arith.mulf %35, %36 : vector<8x256xf32>
    %38 = arith.addf %33, %37 : vector<8x256xf32>
    %39 = vector.extract_strided_slice %26 {offsets = [0, 2], sizes = [8, 1], strides = [1, 1]} : vector<8x3xf32> to vector<8x1xf32>
    %c255_i32 = arith.constant 255 : i32
    %40 = tpu.dynamic_rotate %25 by %c255_i32 dim 1 : vector<1x256xf32>, i32 -> vector<1x256xf32>
    %cst_8 = arith.constant 0.000000e+00 : f32
    %41 = vector.broadcast %cst_8 : f32 to vector<1x256xf32>
    %42 = arith.select %20, %40, %41 : vector<1x256xi1>, vector<1x256xf32>
    %43 = vector.broadcast %39 : vector<8x1xf32> to vector<8x256xf32>
    %44 = vector.broadcast %42 : vector<1x256xf32> to vector<8x256xf32>
    %45 = arith.mulf %43, %44 : vector<8x256xf32>
    %46 = arith.addf %38, %45 : vector<8x256xf32>
    %cst_9 = arith.constant 0.000000e+00 : f32
    %47 = vector.broadcast %cst_9 : f32 to vector<8x256xf32>
    %c0_10 = arith.constant 0 : index
    %c0_11 = arith.constant 0 : index
    %c0_12 = arith.constant 0 : index
    %48 = vector.load %arg2[%c0_10, %c0_11, %c0_12] : memref<2x16x24xf32, #tpu.memory_space<vmem>>, vector<1x16x24xf32>
    %49 = vector.shape_cast %48 : vector<1x16x24xf32> to vector<16x24xf32>
    %c0_13 = arith.constant 0 : index
    %c0_14 = arith.constant 0 : index
    %c0_15 = arith.constant 0 : index
    %50 = vector.load %arg3[%c0_13, %c0_14, %c0_15] : memref<2x16x8xf32, #tpu.memory_space<vmem>>, vector<1x16x8xf32>
    %51 = vector.shape_cast %50 : vector<1x16x8xf32> to vector<16x8xf32>
    %c1_i32_16 = arith.constant 1 : i32
    %52 = tpu.dynamic_rotate %46 by %c1_i32_16 dim 1 : vector<8x256xf32>, i32 -> vector<8x256xf32>
    %cst_17 = arith.constant 0.000000e+00 : f32
    %53 = vector.shape_cast %18 : vector<1x256xi1> to vector<1x256xi1>
    %54 = vector.broadcast %53 : vector<1x256xi1> to vector<8x256xi1>
    %55 = vector.broadcast %cst_17 : f32 to vector<8x256xf32>
    %56 = arith.select %54, %52, %55 : vector<8x256xi1>, vector<8x256xf32>
    %c255_i32_18 = arith.constant 255 : i32
    %57 = tpu.dynamic_rotate %46 by %c255_i32_18 dim 1 : vector<8x256xf32>, i32 -> vector<8x256xf32>
    %cst_19 = arith.constant 0.000000e+00 : f32
    %58 = vector.shape_cast %20 : vector<1x256xi1> to vector<1x256xi1>
    %59 = vector.broadcast %58 : vector<1x256xi1> to vector<8x256xi1>
    %60 = vector.broadcast %cst_19 : f32 to vector<8x256xf32>
    %61 = arith.select %59, %57, %60 : vector<8x256xi1>, vector<8x256xf32>
    %62 = tpu.concatenate %56, %46, %61 in 0 : vector<8x256xf32>, vector<8x256xf32>, vector<8x256xf32> -> vector<24x256xf32>
    %cst_20 = arith.constant dense<0.000000e+00> : vector<16x256xf32>
    %63 = tpu.matmul %49, %62, %cst_20 {dimension_numbers = #tpu.dot_dimension_numbers<[1], [0], [0], [1], [0, 0, 1, 1], [], []>} : vector<16x24xf32>, vector<24x256xf32>, vector<16x256xf32> -> vector<16x256xf32>
    %64 = vector.extract_strided_slice %63 {offsets = [0, 0], sizes = [8, 256], strides = [1, 1]} : vector<16x256xf32> to vector<8x256xf32>
    %65 = math.tanh %64 : vector<8x256xf32>
    %66 = vector.extract_strided_slice %63 {offsets = [8, 0], sizes = [8, 256], strides = [1, 1]} : vector<16x256xf32> to vector<8x256xf32>
    %67 = arith.negf %66 : vector<8x256xf32>
    %68 = math.exp %67 : vector<8x256xf32>
    %cst_21 = arith.constant 1.000000e+00 : f32
    %69 = vector.broadcast %cst_21 : f32 to vector<8x256xf32>
    %70 = arith.addf %69, %68 : vector<8x256xf32>
    %71 = arith.divf %69, %70 : vector<8x256xf32>
    %72 = arith.mulf %65, %71 : vector<8x256xf32>
    %cst_22 = arith.constant dense<0.000000e+00> : vector<16x256xf32>
    %73 = tpu.matmul %51, %72, %cst_22 {dimension_numbers = #tpu.dot_dimension_numbers<[1], [0], [0], [1], [0, 0, 1, 1], [], []>} : vector<16x8xf32>, vector<8x256xf32>, vector<16x256xf32> -> vector<16x256xf32>
    %74 = vector.extract_strided_slice %73 {offsets = [0, 0], sizes = [8, 256], strides = [1, 1]} : vector<16x256xf32> to vector<8x256xf32>
    %75 = arith.addf %74, %46 : vector<8x256xf32>
    %76 = vector.extract_strided_slice %73 {offsets = [8, 0], sizes = [8, 256], strides = [1, 1]} : vector<16x256xf32> to vector<8x256xf32>
    %77 = arith.addf %47, %76 : vector<8x256xf32>
    %c1 = arith.constant 1 : index
    %c0_23 = arith.constant 0 : index
    %c0_24 = arith.constant 0 : index
    %78 = vector.load %arg2[%c1, %c0_23, %c0_24] : memref<2x16x24xf32, #tpu.memory_space<vmem>>, vector<1x16x24xf32>
    %79 = vector.shape_cast %78 : vector<1x16x24xf32> to vector<16x24xf32>
    %c1_25 = arith.constant 1 : index
    %c0_26 = arith.constant 0 : index
    %c0_27 = arith.constant 0 : index
    %80 = vector.load %arg3[%c1_25, %c0_26, %c0_27] : memref<2x16x8xf32, #tpu.memory_space<vmem>>, vector<1x16x8xf32>
    %81 = vector.shape_cast %80 : vector<1x16x8xf32> to vector<16x8xf32>
    %c2_i32_28 = arith.constant 2 : i32
    %82 = tpu.dynamic_rotate %75 by %c2_i32_28 dim 1 : vector<8x256xf32>, i32 -> vector<8x256xf32>
    %cst_29 = arith.constant 0.000000e+00 : f32
    %83 = vector.shape_cast %22 : vector<1x256xi1> to vector<1x256xi1>
    %84 = vector.broadcast %83 : vector<1x256xi1> to vector<8x256xi1>
    %85 = vector.broadcast %cst_29 : f32 to vector<8x256xf32>
    %86 = arith.select %84, %82, %85 : vector<8x256xi1>, vector<8x256xf32>
    %c254_i32 = arith.constant 254 : i32
    %87 = tpu.dynamic_rotate %75 by %c254_i32 dim 1 : vector<8x256xf32>, i32 -> vector<8x256xf32>
    %cst_30 = arith.constant 0.000000e+00 : f32
    %88 = vector.shape_cast %24 : vector<1x256xi1> to vector<1x256xi1>
    %89 = vector.broadcast %88 : vector<1x256xi1> to vector<8x256xi1>
    %90 = vector.broadcast %cst_30 : f32 to vector<8x256xf32>
    %91 = arith.select %89, %87, %90 : vector<8x256xi1>, vector<8x256xf32>
    %92 = tpu.concatenate %86, %75, %91 in 0 : vector<8x256xf32>, vector<8x256xf32>, vector<8x256xf32> -> vector<24x256xf32>
    %cst_31 = arith.constant dense<0.000000e+00> : vector<16x256xf32>
    %93 = tpu.matmul %79, %92, %cst_31 {dimension_numbers = #tpu.dot_dimension_numbers<[1], [0], [0], [1], [0, 0, 1, 1], [], []>} : vector<16x24xf32>, vector<24x256xf32>, vector<16x256xf32> -> vector<16x256xf32>
    %94 = vector.extract_strided_slice %93 {offsets = [0, 0], sizes = [8, 256], strides = [1, 1]} : vector<16x256xf32> to vector<8x256xf32>
    %95 = math.tanh %94 : vector<8x256xf32>
    %96 = vector.extract_strided_slice %93 {offsets = [8, 0], sizes = [8, 256], strides = [1, 1]} : vector<16x256xf32> to vector<8x256xf32>
    %97 = arith.negf %96 : vector<8x256xf32>
    %98 = math.exp %97 : vector<8x256xf32>
    %cst_32 = arith.constant 1.000000e+00 : f32
    %99 = vector.broadcast %cst_32 : f32 to vector<8x256xf32>
    %100 = arith.addf %99, %98 : vector<8x256xf32>
    %101 = arith.divf %99, %100 : vector<8x256xf32>
    %102 = arith.mulf %95, %101 : vector<8x256xf32>
    %cst_33 = arith.constant dense<0.000000e+00> : vector<16x256xf32>
    %103 = tpu.matmul %81, %102, %cst_33 {dimension_numbers = #tpu.dot_dimension_numbers<[1], [0], [0], [1], [0, 0, 1, 1], [], []>} : vector<16x8xf32>, vector<8x256xf32>, vector<16x256xf32> -> vector<16x256xf32>
    %104 = vector.extract_strided_slice %103 {offsets = [0, 0], sizes = [8, 256], strides = [1, 1]} : vector<16x256xf32> to vector<8x256xf32>
    %105 = arith.addf %104, %75 : vector<8x256xf32>
    %106 = vector.extract_strided_slice %103 {offsets = [8, 0], sizes = [8, 256], strides = [1, 1]} : vector<16x256xf32> to vector<8x256xf32>
    %107 = arith.addf %77, %106 : vector<8x256xf32>
    %c0_34 = arith.constant 0 : index
    %c0_35 = arith.constant 0 : index
    %c0_36 = arith.constant 0 : index
    %108 = vector.load %arg2[%c0_34, %c0_35, %c0_36] : memref<2x16x24xf32, #tpu.memory_space<vmem>>, vector<1x16x24xf32>
    %109 = vector.shape_cast %108 : vector<1x16x24xf32> to vector<16x24xf32>
    %c0_37 = arith.constant 0 : index
    %c0_38 = arith.constant 0 : index
    %c0_39 = arith.constant 0 : index
    %110 = vector.load %arg3[%c0_37, %c0_38, %c0_39] : memref<2x16x8xf32, #tpu.memory_space<vmem>>, vector<1x16x8xf32>
    %111 = vector.shape_cast %110 : vector<1x16x8xf32> to vector<16x8xf32>
    %c1_i32_40 = arith.constant 1 : i32
    %112 = tpu.dynamic_rotate %105 by %c1_i32_40 dim 1 : vector<8x256xf32>, i32 -> vector<8x256xf32>
    %cst_41 = arith.constant 0.000000e+00 : f32
    %113 = vector.shape_cast %18 : vector<1x256xi1> to vector<1x256xi1>
    %114 = vector.broadcast %113 : vector<1x256xi1> to vector<8x256xi1>
    %115 = vector.broadcast %cst_41 : f32 to vector<8x256xf32>
    %116 = arith.select %114, %112, %115 : vector<8x256xi1>, vector<8x256xf32>
    %c255_i32_42 = arith.constant 255 : i32
    %117 = tpu.dynamic_rotate %105 by %c255_i32_42 dim 1 : vector<8x256xf32>, i32 -> vector<8x256xf32>
    %cst_43 = arith.constant 0.000000e+00 : f32
    %118 = vector.shape_cast %20 : vector<1x256xi1> to vector<1x256xi1>
    %119 = vector.broadcast %118 : vector<1x256xi1> to vector<8x256xi1>
    %120 = vector.broadcast %cst_43 : f32 to vector<8x256xf32>
    %121 = arith.select %119, %117, %120 : vector<8x256xi1>, vector<8x256xf32>
    %122 = tpu.concatenate %116, %105, %121 in 0 : vector<8x256xf32>, vector<8x256xf32>, vector<8x256xf32> -> vector<24x256xf32>
    %cst_44 = arith.constant dense<0.000000e+00> : vector<16x256xf32>
    %123 = tpu.matmul %109, %122, %cst_44 {dimension_numbers = #tpu.dot_dimension_numbers<[1], [0], [0], [1], [0, 0, 1, 1], [], []>} : vector<16x24xf32>, vector<24x256xf32>, vector<16x256xf32> -> vector<16x256xf32>
    %124 = vector.extract_strided_slice %123 {offsets = [0, 0], sizes = [8, 256], strides = [1, 1]} : vector<16x256xf32> to vector<8x256xf32>
    %125 = math.tanh %124 : vector<8x256xf32>
    %126 = vector.extract_strided_slice %123 {offsets = [8, 0], sizes = [8, 256], strides = [1, 1]} : vector<16x256xf32> to vector<8x256xf32>
    %127 = arith.negf %126 : vector<8x256xf32>
    %128 = math.exp %127 : vector<8x256xf32>
    %cst_45 = arith.constant 1.000000e+00 : f32
    %129 = vector.broadcast %cst_45 : f32 to vector<8x256xf32>
    %130 = arith.addf %129, %128 : vector<8x256xf32>
    %131 = arith.divf %129, %130 : vector<8x256xf32>
    %132 = arith.mulf %125, %131 : vector<8x256xf32>
    %cst_46 = arith.constant dense<0.000000e+00> : vector<16x256xf32>
    %133 = tpu.matmul %111, %132, %cst_46 {dimension_numbers = #tpu.dot_dimension_numbers<[1], [0], [0], [1], [0, 0, 1, 1], [], []>} : vector<16x8xf32>, vector<8x256xf32>, vector<16x256xf32> -> vector<16x256xf32>
    %134 = vector.extract_strided_slice %133 {offsets = [0, 0], sizes = [8, 256], strides = [1, 1]} : vector<16x256xf32> to vector<8x256xf32>
    %135 = arith.addf %134, %105 : vector<8x256xf32>
    %136 = vector.extract_strided_slice %133 {offsets = [8, 0], sizes = [8, 256], strides = [1, 1]} : vector<16x256xf32> to vector<8x256xf32>
    %137 = arith.addf %107, %136 : vector<8x256xf32>
    %c1_47 = arith.constant 1 : index
    %c0_48 = arith.constant 0 : index
    %c0_49 = arith.constant 0 : index
    %138 = vector.load %arg2[%c1_47, %c0_48, %c0_49] : memref<2x16x24xf32, #tpu.memory_space<vmem>>, vector<1x16x24xf32>
    %139 = vector.shape_cast %138 : vector<1x16x24xf32> to vector<16x24xf32>
    %c1_50 = arith.constant 1 : index
    %c0_51 = arith.constant 0 : index
    %c0_52 = arith.constant 0 : index
    %140 = vector.load %arg3[%c1_50, %c0_51, %c0_52] : memref<2x16x8xf32, #tpu.memory_space<vmem>>, vector<1x16x8xf32>
    %141 = vector.shape_cast %140 : vector<1x16x8xf32> to vector<16x8xf32>
    %c2_i32_53 = arith.constant 2 : i32
    %142 = tpu.dynamic_rotate %135 by %c2_i32_53 dim 1 : vector<8x256xf32>, i32 -> vector<8x256xf32>
    %cst_54 = arith.constant 0.000000e+00 : f32
    %143 = vector.shape_cast %22 : vector<1x256xi1> to vector<1x256xi1>
    %144 = vector.broadcast %143 : vector<1x256xi1> to vector<8x256xi1>
    %145 = vector.broadcast %cst_54 : f32 to vector<8x256xf32>
    %146 = arith.select %144, %142, %145 : vector<8x256xi1>, vector<8x256xf32>
    %c254_i32_55 = arith.constant 254 : i32
    %147 = tpu.dynamic_rotate %135 by %c254_i32_55 dim 1 : vector<8x256xf32>, i32 -> vector<8x256xf32>
    %cst_56 = arith.constant 0.000000e+00 : f32
    %148 = vector.shape_cast %24 : vector<1x256xi1> to vector<1x256xi1>
    %149 = vector.broadcast %148 : vector<1x256xi1> to vector<8x256xi1>
    %150 = vector.broadcast %cst_56 : f32 to vector<8x256xf32>
    %151 = arith.select %149, %147, %150 : vector<8x256xi1>, vector<8x256xf32>
    %152 = tpu.concatenate %146, %135, %151 in 0 : vector<8x256xf32>, vector<8x256xf32>, vector<8x256xf32> -> vector<24x256xf32>
    %cst_57 = arith.constant dense<0.000000e+00> : vector<16x256xf32>
    %153 = tpu.matmul %139, %152, %cst_57 {dimension_numbers = #tpu.dot_dimension_numbers<[1], [0], [0], [1], [0, 0, 1, 1], [], []>} : vector<16x24xf32>, vector<24x256xf32>, vector<16x256xf32> -> vector<16x256xf32>
    %154 = vector.extract_strided_slice %153 {offsets = [0, 0], sizes = [8, 256], strides = [1, 1]} : vector<16x256xf32> to vector<8x256xf32>
    %155 = math.tanh %154 : vector<8x256xf32>
    %156 = vector.extract_strided_slice %153 {offsets = [8, 0], sizes = [8, 256], strides = [1, 1]} : vector<16x256xf32> to vector<8x256xf32>
    %157 = arith.negf %156 : vector<8x256xf32>
    %158 = math.exp %157 : vector<8x256xf32>
    %cst_58 = arith.constant 1.000000e+00 : f32
    %159 = vector.broadcast %cst_58 : f32 to vector<8x256xf32>
    %160 = arith.addf %159, %158 : vector<8x256xf32>
    %161 = arith.divf %159, %160 : vector<8x256xf32>
    %162 = arith.mulf %155, %161 : vector<8x256xf32>
    %cst_59 = arith.constant dense<0.000000e+00> : vector<16x256xf32>
    %163 = tpu.matmul %141, %162, %cst_59 {dimension_numbers = #tpu.dot_dimension_numbers<[1], [0], [0], [1], [0, 0, 1, 1], [], []>} : vector<16x8xf32>, vector<8x256xf32>, vector<16x256xf32> -> vector<16x256xf32>
    %164 = vector.extract_strided_slice %163 {offsets = [8, 0], sizes = [8, 256], strides = [1, 1]} : vector<16x256xf32> to vector<8x256xf32>
    %165 = arith.addf %137, %164 : vector<8x256xf32>
    %cst_60 = arith.constant 0.000000e+00 : f32
    %166 = vector.broadcast %cst_60 : f32 to vector<8x256xf32>
    %167 = arith.maximumf %165, %166 : vector<8x256xf32>
    %c0_61 = arith.constant 0 : index
    %c0_62 = arith.constant 0 : index
    %168 = vector.load %arg4[%c0_61, %c0_62] : memref<8x24xf32, #tpu.memory_space<vmem>>, vector<8x24xf32>
    %c1_i32_63 = arith.constant 1 : i32
    %169 = tpu.dynamic_rotate %167 by %c1_i32_63 dim 1 : vector<8x256xf32>, i32 -> vector<8x256xf32>
    %cst_64 = arith.constant 0.000000e+00 : f32
    %170 = vector.shape_cast %18 : vector<1x256xi1> to vector<1x256xi1>
    %171 = vector.broadcast %170 : vector<1x256xi1> to vector<8x256xi1>
    %172 = vector.broadcast %cst_64 : f32 to vector<8x256xf32>
    %173 = arith.select %171, %169, %172 : vector<8x256xi1>, vector<8x256xf32>
    %c255_i32_65 = arith.constant 255 : i32
    %174 = tpu.dynamic_rotate %167 by %c255_i32_65 dim 1 : vector<8x256xf32>, i32 -> vector<8x256xf32>
    %cst_66 = arith.constant 0.000000e+00 : f32
    %175 = vector.shape_cast %20 : vector<1x256xi1> to vector<1x256xi1>
    %176 = vector.broadcast %175 : vector<1x256xi1> to vector<8x256xi1>
    %177 = vector.broadcast %cst_66 : f32 to vector<8x256xf32>
    %178 = arith.select %176, %174, %177 : vector<8x256xi1>, vector<8x256xf32>
    %179 = tpu.concatenate %173, %167, %178 in 0 : vector<8x256xf32>, vector<8x256xf32>, vector<8x256xf32> -> vector<24x256xf32>
    %cst_67 = arith.constant dense<0.000000e+00> : vector<8x256xf32>
    %180 = tpu.matmul %168, %179, %cst_67 {dimension_numbers = #tpu.dot_dimension_numbers<[1], [0], [0], [1], [0, 0, 1, 1], [], []>} : vector<8x24xf32>, vector<24x256xf32>, vector<8x256xf32> -> vector<8x256xf32>
    %cst_68 = arith.constant 0.000000e+00 : f32
    %181 = vector.broadcast %cst_68 : f32 to vector<8x256xf32>
    %182 = arith.maximumf %180, %181 : vector<8x256xf32>
    %c0_69 = arith.constant 0 : index
    %c0_70 = arith.constant 0 : index
    %183 = vector.load %arg5[%c0_69, %c0_70] : memref<1x24xf32, #tpu.memory_space<vmem>>, vector<1x24xf32>
    %c1_i32_71 = arith.constant 1 : i32
    %184 = tpu.dynamic_rotate %182 by %c1_i32_71 dim 1 : vector<8x256xf32>, i32 -> vector<8x256xf32>
    %cst_72 = arith.constant 0.000000e+00 : f32
    %185 = vector.shape_cast %18 : vector<1x256xi1> to vector<1x256xi1>
    %186 = vector.broadcast %185 : vector<1x256xi1> to vector<8x256xi1>
    %187 = vector.broadcast %cst_72 : f32 to vector<8x256xf32>
    %188 = arith.select %186, %184, %187 : vector<8x256xi1>, vector<8x256xf32>
    %c255_i32_73 = arith.constant 255 : i32
    %189 = tpu.dynamic_rotate %182 by %c255_i32_73 dim 1 : vector<8x256xf32>, i32 -> vector<8x256xf32>
    %cst_74 = arith.constant 0.000000e+00 : f32
    %190 = vector.shape_cast %20 : vector<1x256xi1> to vector<1x256xi1>
    %191 = vector.broadcast %190 : vector<1x256xi1> to vector<8x256xi1>
    %192 = vector.broadcast %cst_74 : f32 to vector<8x256xf32>
    %193 = arith.select %191, %189, %192 : vector<8x256xi1>, vector<8x256xf32>
    %194 = tpu.concatenate %188, %182, %193 in 0 : vector<8x256xf32>, vector<8x256xf32>, vector<8x256xf32> -> vector<24x256xf32>
    %cst_75 = arith.constant dense<0.000000e+00> : vector<1x256xf32>
    %195 = tpu.matmul %183, %194, %cst_75 {dimension_numbers = #tpu.dot_dimension_numbers<[1], [0], [0], [1], [0, 0, 1, 1], [], []>} : vector<1x24xf32>, vector<24x256xf32>, vector<1x256xf32> -> vector<1x256xf32>
    %c0_76 = arith.constant 0 : index
    %c0_77 = arith.constant 0 : index
    %196 = vector.load %arg6[%c0_76, %c0_77] : memref<1x256xf32, #tpu.memory_space<vmem>>, vector<1x256xf32>
    tpu.vector_store %arg6[%c0_76, %c0_77], %195 {strides = array<i32>} : memref<1x256xf32, #tpu.memory_space<vmem>>, vector<1x256xf32>,
    return
  }
}

</mosaic_0001>

<bundles_post_ra>
// kernel: tpu_custom_call.1
= control target key start
LH: loop header
LB: loop body
LE: loop exit
PB: predicated region body
PF: predicated region fallthrough
CT: control target
= control target key end

     0   :  { %v1085_v2 = vmov 2   ;;  %s1456_s0 = inlined_call_operand.vmem [shape: f32[1,256], index: 0, kind: input, shape index: {}]   ;;  %s1457_s1 = inlined_call_operand.vmem [shape: f32[8,3], index: 1, kind: input, shape index: {}]   ;;  %s1458_s2 = inlined_call_operand.vmem [shape: f32[2,16,24], index: 2, kind: input, shape index: {}]   ;;  %s1459_s3 = inlined_call_operand.vmem [shape: f32[2,16,8], index: 3, kind: input, shape index: {}]   ;;  %s1460_s4 = inlined_call_operand.vmem [shape: f32[8,24], index: 4, kind: input, shape index: {}]   ;;  %s1461_s5 = inlined_call_operand.vmem [shape: f32[1,24], index: 5, kind: input, shape index: {}]   ;;  %s1462_s6 = inlined_call_operand.hbm [shape: f32[1,256], index: 6, kind: output, shape index: {}]  }
   0x1   :  { %v59_v0 = vld [vmem:[%s1456_s0] sm:$0x3]  ;;  %1010 = vset.pattern.permute.xlu0 %v1085_v2 }
   0x2   :  { %v62_v1 = vperm.slane %v59_v0, 0 }
   0x3   :  { %11 = vsyncpa [#allocation3], 0  ;;  %v1086_v3 = vmov 0   ;;  %s1087_s23 = smov 127   ;;  %s1088_s24 = smov 1   ;;  %v60_v4 = vld [vmem:[%s1457_s1] sm:$0xff]  ;;  %v24_v7 = vlaneseq }
   0x4   :  { %1008 = vset.pattern.permute.xlu2 %v1086_v3  ;;  %92 = vrot.lane.b32.xlu1 %v62_v1, %s1087_s23  ;;  %v63_v5 = vperm.slane %v59_v0, 1  ;;  %v1089_v6 = vmov 1   ;;  %v1190_v46 = vld [vmem:[%s1458_s2] sm:$0xff]  ;;  %vm139_vm5 = vcmask 195584   ;;  %v1207_v49 = vld [vmem:[%s1458_s2 + $0x8] sm:$0xff]  ;;  %vm234_vm14 = vcmask 64512  }
   0x5   :  { %66 = vrot.lane.b32.xlu0 %v62_v1, %s1088_s24  ;;  %77 = vperm.xlu2 %1008, %v60_v4   ;;  %v1139_v8 = vand.u32 127, %v24_v7  ;;  %s1090_s7 = smov 2   ;;  %s1091_s8 = smov 126  }
   0x6   :  { %s1092_s20 = smov [#allocation2]  }
   0x7   :  { %v26_v10 = vadd.s32 128, %v1139_v8  ;;  %vm53_vm0 = vcmp.lt.s32.totalorder %v1139_v8, 127  ;;  %vm70_vm1 = vcmp.lt.s32.totalorder %v1139_v8, 1  ;;  %vm51_vm2 = vcmp.ge.s32.totalorder %v1139_v8, 1  ;;  %s917_s21 = sshll.u32 %s1092_s20, 4  ;;  %s918_s21 = int_to_ptr.vmem [resolvable:$true] %s917_s21 }
   0x8   :  { %vm57_vm15 = vcmp.lt.s32.totalorder %v1139_v8, 126 }
   0x9   :  { %v1142_v13 = vand.u32 127, %v26_v10 }
   0xb   :  { %vm52_vm3 = vcmp.ge.s32.totalorder %v1142_v13, 1  ;;  %vm54_vm4 = vcmp.lt.s32.totalorder %v1142_v13, 127 }
   0xc   :  { %94 = vrot.lane.b32.xlu1 %v63_v5, %s1087_s23 }
   0xd   :  { %68 = vrot.lane.b32.xlu0 %v63_v5, %s1088_s24  ;;  %1009 = vset.pattern.permute.xlu2 %v1089_v6 }
   0xe   :  { %85 = vperm.xlu2 %1009, %v60_v4  }
  0x15   :  { %102 = vperm.xlu0 %1010, %v60_v4  }
  0x5f   :  { %v78_v9 = vpop.permute.xlu2 %77 }
  0x68   :  { %v86_v22 = vpop.permute.xlu2 %85 }
  0x69   :  { %v88_v29 = vmul.f32 %v86_v22, %v62_v1  ;;  %v89_v30 = vmul.f32 %v86_v22, %v63_v5  ;;  %v1216_v22 = vld [vmem:[%s1459_s3] sm:$0xff] }
  0x76   :  { %v93_v11 = vpop.permute.xlu1 %92 }
  0x77   :  { %v67_v12 = vpop.permute.xlu0 %66 }
  0x7e   :  { %v95_v14 = vpop.permute.xlu1 %94 }
  0x7f   :  { %v69_v15 = vpop.permute.xlu0 %68  ;;  %v97_v16 = vsel %vm53_vm0, %v93_v11, %v95_v14  ;;  %v98_v17 = vsel %vm53_vm0, %v95_v14, %v93_v11 }
  0x80   :  { %v71_v18 = vsel %vm70_vm1, %v67_v12, %v69_v15  ;;  %v72_v19 = vsel %vm70_vm1, %v69_v15, %v67_v12  ;;  %v99_v25 = vsel %vm53_vm0, %v97_v16, 0.0  ;;  %v100_v26 = vsel %vm54_vm4, %v98_v17, 0.0 }
  0x81   :  { %v73_v20 = vsel %vm51_vm2, %v72_v19, 0.0  ;;  %v74_v21 = vsel %vm52_vm3, %v71_v18, 0.0  ;;  %v105_v31 = vperm.slane %v99_v25, 0  ;;  %v106_v32 = vperm.slane %v100_v26, 0 }
  0x82   :  { %v80_v23 = vperm.slane %v73_v20, 0  ;;  %v81_v24 = vperm.slane %v74_v21, 0 }
  0x84   :  { %v82_v27 = vmul.f32 %v80_v23, %v78_v9  ;;  %v83_v28 = vmul.f32 %v81_v24, %v78_v9 }
  0x86   :  { %v90_v34 = vadd.f32 %v88_v29, %v82_v27  ;;  %v91_v35 = vadd.f32 %v89_v30, %v83_v28  ;;  %v1239_v28 = vld [vmem:[%s1459_s3 + $0x8] sm:$0xff] }
  0x87   :  { %v103_v33 = vpop.permute.xlu0 %102 }
  0x88   :  { %v107_v36 = vmul.f32 %v105_v31, %v103_v33  ;;  %v108_v37 = vmul.f32 %v106_v32, %v103_v33 }
  0x8a   :  { %v1165_v38 = vadd.f32 %v107_v36, %v90_v34  ;;  %v1167_v39 = vadd.f32 %v108_v37, %v91_v35  ;;  %v1263_v35 = vld [vmem:[%s1458_s2 + $0x10] sm:$0xff] }
  0x8c   :  { %127 = vrot.lane.b32.xlu1 %v1165_v38, %s1087_s23  ;;  %129 = vrot.lane.b32.xlu2 %v1167_v39, %s1087_s23 }
  0x94   :  { %115 = vrot.lane.b32.xlu1 %v1165_v38, %s1088_s24  ;;  %117 = vrot.lane.b32.xlu2 %v1167_v39, %s1088_s24 }
  0xe6   :  { %v130_v40 = vpop.permute.xlu2 %129 }
  0xee   :  { %v118_v44 = vpop.permute.xlu2 %117 }
  0xfe   :  { %v128_v41 = vpop.permute.xlu1 %127 }
  0xff   :  { %v131_v42 = vsel %vm53_vm0, %v128_v41, %v130_v40  ;;  %v132_v43 = vsel %vm53_vm0, %v130_v40, %v128_v41 }
 0x100   :  { %928 = vmatpush.msk.msra.mxu0 %vm53_vm0, %v131_v42  ;;  %932 = vmatpush.msk.msra.mxu1 %vm54_vm4, %v132_v43 }
 0x102   :  { %160 = vmatpush.msra.mxu0 %v1165_v38  ;;  %183 = vmatpush.msra.mxu1 %v1167_v39 }
 0x106   :  { %v116_v45 = vpop.permute.xlu1 %115 }
 0x107   :  { %v120_v47 = vsel %vm70_vm1, %v118_v44, %v116_v45  ;;  %v119_v48 = vsel %vm70_vm1, %v116_v45, %v118_v44 }
 0x108   :  { %929 = vmatpush.msk.msra.mxu0 %vm51_vm2, %v120_v47  ;;  %933 = vmatpush.msk.msra.mxu1 %vm52_vm3, %v119_v48 }
 0x109   :  { %930 = vmatmul.msk.f32.vlgmr.msra.gmra.mxu0 %vm139_vm5, %v1190_v46  ;;  %934 = vmatmul.msk.f32.vlgmr.msra.gmra.mxu1 %vm139_vm5, %v1190_v46 }
 0x111   :  { %931 = vmatmul.msk.f32.gmra.mxu0 %vm139_vm5, %v1207_v49  ;;  %935 = vmatmul.msk.f32.gmra.mxu1 %vm139_vm5, %v1207_v49 }
 0x186   :  { %v163_v50 = vpop.f32.mrf.mxu0  ;;  %v186_v51 = vpop.f32.mrf.mxu1 }
 0x18e   :  { %v166_v52 = vpop.f32.mrf.mxu0  ;;  %v189_v53 = vpop.f32.mrf.mxu1 }
 0x18f   :  { %v936_v54 = vmul.f32 -1.442695, %v166_v52  ;;  %v937_v55 = vmul.f32 -1.442695, %v189_v53 }
 0x191   :  { %1011 = vpow2.f32 %v936_v54 }
 0x192   :  { %1013 = vpow2.f32 %v937_v55 }
 0x197   :  { %v1012_v56 = vpop.eup %1011 }
 0x198   :  { %v1014_v57 = vpop.eup %1013  ;;  %v200_v58 = vadd.f32 1.0, %v1012_v56 }
 0x199   :  { %v201_v59 = vadd.f32 1.0, %v1014_v57 }
 0x19a   :  { %1015 = vrcp.f32 %v200_v58  ;;  %v213_v1 = vand.u32 2147483648, %v200_v58  ;;  %v211_v4 = vand.u32 2147483647, %v200_v58  ;;  %vm207_vm8 = vweird.f32 %v200_v58 }
 0x19b   :  { %1017 = vrcp.f32 %v201_v59  ;;  %v228_v5 = vand.u32 2147483648, %v201_v59  ;;  %v226_v9 = vand.u32 2147483647, %v201_v59  ;;  %vm222_vm10 = vweird.f32 %v201_v59 }
 0x19c   :  { %1019 = vtanh.f32 %v163_v50  ;;  %v214_v11 = vor.u32 1.1754944e-38, %v213_v1  ;;  %vm212_vm11 = vcmp.eq.f32.partialorder %v211_v4, 8.507059e+37 }
 0x19d   :  { %1021 = vtanh.f32 %v186_v51  ;;  %v229_v16 = vor.u32 1.1754944e-38, %v228_v5  ;;  %vm227_vm13 = vcmp.eq.f32.partialorder %v226_v9, 8.507059e+37 }
 0x1a0   :  { %v1016_v60 = vpop.eup %1015 }
 0x1a1   :  { %v1018_v61 = vpop.eup %1017  ;;  %v203_v62 = vmul.f32 %v1016_v60, %v200_v58  ;;  %vm208_vm6 = vweird.f32 %v1016_v60 }
 0x1a2   :  { %v218_v63 = vmul.f32 %v1018_v61, %v201_v59  ;;  %vm223_vm7 = vweird.f32 %v1018_v61  ;;  %vm209_vm9 = vmor %vm207_vm8, %vm208_vm6  ;;  %v1020_v14 = vpop.eup %1019  ;;  %vm1466_vm6 = vcmp.lt.s32.totalorder %v1142_v13, 126  ;;  %vm1464_vm8 = vcmp.ge.s32.totalorder %v1139_v8, 2 }
 0x1a3   :  { %v204_v0 = vsub.f32 1.0, %v203_v62  ;;  %vm224_vm12 = vmor %vm222_vm10, %vm223_vm7  ;;  %v1022_v17 = vpop.eup %1021  ;;  %vm1465_vm7 = vcmp.lt.s32.totalorder %v1139_v8, 2 }
 0x1a4   :  { %v219_v2 = vsub.f32 1.0, %v218_v63 }
 0x1a5   :  { %v205_v3 = vmul.f32 %v1016_v60, %v204_v0 }
 0x1a6   :  { %v220_v6 = vmul.f32 %v1018_v61, %v219_v2 }
 0x1a7   :  { %v206_v10 = vadd.f32 %v1016_v60, %v205_v3 }
 0x1a8   :  { %v221_v12 = vadd.f32 %v1018_v61, %v220_v6 }
 0x1a9   :  { %v210_v15 = vsel %vm209_vm9, %v1016_v60, %v206_v10  ;;  %vm1463_vm9 = vcmp.ge.s32.totalorder %v1142_v13, 2 }
 0x1aa   :  { %v215_v18 = vsel %vm212_vm11, %v214_v11, %v210_v15  ;;  %v225_v19 = vsel %vm224_vm12, %v1018_v61, %v221_v12  ;;  %v1293_v15 = vld [vmem:[%s1459_s3 + $0x10] sm:$0xff] }
 0x1ab   :  { %v232_v20 = vmul.f32 %v1020_v14, %v215_v18  ;;  %v230_v21 = vsel %vm227_vm13, %v229_v16, %v225_v19 }
 0x1ac   :  { %v233_v23 = vmul.f32 %v1022_v17, %v230_v21  ;;  %v1302_v17 = vld [vmem:[%s1459_s3 + $0x18] sm:$0xff] }
 0x1ad   :  { %256 = vmatpush.msra.mxu2 %v232_v20 }
 0x1ae   :  { %279 = vmatpush.msra.mxu3 %v233_v23  ;;  %938 = vmatmul.msk.f32.vlgmr.msra.gmra.mxu2 %vm234_vm14, %v1216_v22 }
 0x1af   :  { %940 = vmatmul.msk.f32.vlgmr.msra.gmra.mxu3 %vm234_vm14, %v1216_v22 }
 0x1b6   :  { %939 = vmatmul.msk.f32.gmra.mxu2 %vm234_vm14, %v1239_v28 }
 0x1b7   :  { %941 = vmatmul.msk.f32.gmra.mxu3 %vm234_vm14, %v1239_v28 }
 0x231   :  { %v258_v24 = vpop.f32.mrf.mxu2 }
 0x232   :  { %v1223_v25 = vadd.f32 %v258_v24, %v1165_v38  ;;  %v281_v26 = vpop.f32.mrf.mxu3  ;;  %v1280_v38 = vld [vmem:[%s1458_s2 + $0x18] sm:$0xff] }
 0x233   :  { %v1226_v27 = vadd.f32 %v281_v26, %v1167_v39 }
 0x234   :  { %297 = vrot.lane.b32.xlu2 %v1223_v25, %s1090_s7  ;;  %310 = vrot.lane.b32.xlu0 %v1223_v25, %s1091_s8 }
 0x235   :  { %312 = vrot.lane.b32.xlu1 %v1226_v27, %s1091_s8 }
 0x239   :  { %v1286_v39 = vpop.f32.mrf.mxu2 }
 0x23a   :  { %v1288_v40 = vpop.f32.mrf.mxu3 }
 0x23c   :  { %299 = vrot.lane.b32.xlu0 %v1226_v27, %s1090_s7 }
 0x28e   :  { %v298_v33 = vpop.permute.xlu2 %297 }
 0x2a6   :  { %v311_v29 = vpop.permute.xlu0 %310 }
 0x2a7   :  { %v313_v30 = vpop.permute.xlu1 %312 }
 0x2a8   :  { %v315_v31 = vsel %vm57_vm15, %v311_v29, %v313_v30  ;;  %v316_v32 = vsel %vm57_vm15, %v313_v30, %v311_v29 }
 0x2a9   :  { %946 = vmatpush.msk.msrb.mxu2 %vm57_vm15, %v315_v31  ;;  %950 = vmatpush.msk.msrb.mxu3 %vm1466_vm6, %v316_v32 }
 0x2ab   :  { %343 = vmatpush.msrb.mxu2 %v1223_v25  ;;  %366 = vmatpush.msrb.mxu3 %v1226_v27 }
 0x2ae   :  { %v300_v34 = vpop.permute.xlu0 %299 }
 0x2af   :  { %v303_v36 = vsel %vm1465_vm7, %v300_v34, %v298_v33  ;;  %v302_v37 = vsel %vm1465_vm7, %v298_v33, %v300_v34 }
 0x2b0   :  { %947 = vmatpush.msk.msrb.mxu2 %vm1464_vm8, %v303_v36  ;;  %951 = vmatpush.msk.msrb.mxu3 %vm1463_vm9, %v302_v37 }
 0x2b1   :  { %948 = vmatmul.msk.f32.vlgmr.msrb.gmra.mxu2 %vm139_vm5, %v1263_v35  ;;  %952 = vmatmul.msk.f32.vlgmr.msrb.gmra.mxu3 %vm139_vm5, %v1263_v35 }
 0x2b9   :  { %949 = vmatmul.msk.f32.gmra.mxu2 %vm139_vm5, %v1280_v38  ;;  %953 = vmatmul.msk.f32.gmra.mxu3 %vm139_vm5, %v1280_v38 }
 0x334   :  { %v346_v41 = vpop.f32.mrf.mxu2  ;;  %v369_v42 = vpop.f32.mrf.mxu3 }
 0x33c   :  { %v349_v43 = vpop.f32.mrf.mxu2  ;;  %v372_v44 = vpop.f32.mrf.mxu3 }
 0x33d   :  { %v954_v45 = vmul.f32 -1.442695, %v349_v43  ;;  %v955_v47 = vmul.f32 -1.442695, %v372_v44 }
 0x33f   :  { %1023 = vpow2.f32 %v954_v45 }
 0x340   :  { %1025 = vpow2.f32 %v955_v47 }
 0x345   :  { %v1024_v48 = vpop.eup %1023 }
 0x346   :  { %v1026_v50 = vpop.eup %1025  ;;  %v383_v51 = vadd.f32 1.0, %v1024_v48 }
 0x347   :  { %v384_v52 = vadd.f32 1.0, %v1026_v50 }
 0x348   :  { %1027 = vrcp.f32 %v383_v51  ;;  %v396_v58 = vand.u32 2147483648, %v383_v51  ;;  %v394_v61 = vand.u32 2147483647, %v383_v51  ;;  %vm390_vm13 = vweird.f32 %v383_v51 }
 0x349   :  { %1029 = vrcp.f32 %v384_v52  ;;  %v411_v62 = vand.u32 2147483648, %v384_v52  ;;  %vm405_vm11 = vweird.f32 %v384_v52  ;;  %v409_v0 = vand.u32 2147483647, %v384_v52 }
 0x34a   :  { %1031 = vtanh.f32 %v346_v41  ;;  %v397_v2 = vor.u32 1.1754944e-38, %v396_v58  ;;  %vm395_vm8 = vcmp.eq.f32.partialorder %v394_v61, 8.507059e+37 }
 0x34b   :  { %1033 = vtanh.f32 %v369_v42  ;;  %v412_v6 = vor.u32 1.1754944e-38, %v411_v62  ;;  %vm410_vm6 = vcmp.eq.f32.partialorder %v409_v0, 8.507059e+37 }
 0x34e   :  { %v1028_v53 = vpop.eup %1027 }
 0x34f   :  { %v1030_v54 = vpop.eup %1029  ;;  %v386_v55 = vmul.f32 %v1028_v53, %v383_v51  ;;  %vm391_vm10 = vweird.f32 %v1028_v53 }
 0x350   :  { %v401_v56 = vmul.f32 %v1030_v54, %v384_v52  ;;  %vm406_vm12 = vweird.f32 %v1030_v54  ;;  %vm392_vm9 = vmor %vm390_vm13, %vm391_vm10  ;;  %v1032_v4 = vpop.eup %1031 }
 0x351   :  { %v387_v57 = vsub.f32 1.0, %v386_v55  ;;  %vm407_vm7 = vmor %vm405_vm11, %vm406_vm12  ;;  %v1034_v9 = vpop.eup %1033 }
 0x352   :  { %v402_v59 = vsub.f32 1.0, %v401_v56 }
 0x353   :  { %v388_v60 = vmul.f32 %v1028_v53, %v387_v57 }
 0x354   :  { %v403_v63 = vmul.f32 %v1030_v54, %v402_v59 }
 0x355   :  { %v389_v1 = vadd.f32 %v1028_v53, %v388_v60 }
 0x356   :  { %v404_v3 = vadd.f32 %v1030_v54, %v403_v63 }
 0x357   :  { %v393_v5 = vsel %vm392_vm9, %v1028_v53, %v389_v1 }
 0x358   :  { %v398_v10 = vsel %vm395_vm8, %v397_v2, %v393_v5  ;;  %v408_v11 = vsel %vm407_vm7, %v1030_v54, %v404_v3 }
 0x359   :  { %v415_v12 = vmul.f32 %v1032_v4, %v398_v10  ;;  %v413_v14 = vsel %vm410_vm6, %v412_v6, %v408_v11 }
 0x35a   :  { %v416_v16 = vmul.f32 %v1034_v9, %v413_v14 }
 0x35b   :  { %438 = vmatpush.msrb.mxu0 %v415_v12 }
 0x35c   :  { %461 = vmatpush.msrb.mxu1 %v416_v16  ;;  %956 = vmatmul.msk.f32.vlgmr.msrb.gmra.mxu0 %vm234_vm14, %v1293_v15 }
 0x35d   :  { %958 = vmatmul.msk.f32.vlgmr.msrb.gmra.mxu1 %vm234_vm14, %v1293_v15 }
 0x364   :  { %957 = vmatmul.msk.f32.gmra.mxu0 %vm234_vm14, %v1302_v17 }
 0x365   :  { %959 = vmatmul.msk.f32.gmra.mxu1 %vm234_vm14, %v1302_v17 }
 0x3d9   :  { %v440_v18 = vpop.f32.mrf.mxu0 }
 0x3da   :  { %v1309_v19 = vadd.f32 %v440_v18, %v1223_v25  ;;  %v463_v20 = vpop.f32.mrf.mxu1 }
 0x3db   :  { %v1312_v21 = vadd.f32 %v463_v20, %v1226_v27 }
 0x3dc   :  { %473 = vrot.lane.b32.xlu0 %v1309_v19, %s1088_s24  ;;  %481 = vrot.lane.b32.xlu1 %v1309_v19, %s1087_s23 }
 0x3dd   :  { %483 = vrot.lane.b32.xlu2 %v1312_v21, %s1087_s23 }
 0x3e1   :  { %v1356_v6 = vpop.f32.mrf.mxu0 }
 0x3e2   :  { %v1358_v9 = vpop.f32.mrf.mxu1 }
 0x3e4   :  { %475 = vrot.lane.b32.xlu1 %v1312_v21, %s1088_s24 }
 0x437   :  { %v484_v23 = vpop.permute.xlu2 %483 }
 0x44e   :  { %v482_v24 = vpop.permute.xlu1 %481  ;;  %v474_v27 = vpop.permute.xlu0 %473 }
 0x44f   :  { %v485_v25 = vsel %vm53_vm0, %v482_v24, %v484_v23  ;;  %v486_v26 = vsel %vm53_vm0, %v484_v23, %v482_v24 }
 0x450   :  { %960 = vmatpush.msk.msra.mxu2 %vm53_vm0, %v485_v25  ;;  %964 = vmatpush.msk.msra.mxu3 %vm54_vm4, %v486_v26 }
 0x452   :  { %503 = vmatpush.msra.mxu2 %v1309_v19  ;;  %526 = vmatpush.msra.mxu3 %v1312_v21 }
 0x456   :  { %v476_v29 = vpop.permute.xlu1 %475 }
 0x457   :  { %v477_v30 = vsel %vm70_vm1, %v474_v27, %v476_v29  ;;  %v478_v31 = vsel %vm70_vm1, %v476_v29, %v474_v27 }
 0x458   :  { %961 = vmatpush.msk.msra.mxu2 %vm51_vm2, %v478_v31  ;;  %965 = vmatpush.msk.msra.mxu3 %vm52_vm3, %v477_v30 }
 0x459   :  { %962 = vmatmul.msk.f32.vlgmr.msra.gmra.mxu2 %vm139_vm5, %v1190_v46  ;;  %966 = vmatmul.msk.f32.vlgmr.msra.gmra.mxu3 %vm139_vm5, %v1190_v46 }
 0x461   :  { %963 = vmatmul.msk.f32.gmra.mxu2 %vm139_vm5, %v1207_v49  ;;  %967 = vmatmul.msk.f32.gmra.mxu3 %vm139_vm5, %v1207_v49 }
 0x4dc   :  { %v506_v32 = vpop.f32.mrf.mxu2  ;;  %v529_v33 = vpop.f32.mrf.mxu3 }
 0x4e4   :  { %v509_v34 = vpop.f32.mrf.mxu2  ;;  %v532_v36 = vpop.f32.mrf.mxu3 }
 0x4e5   :  { %v968_v37 = vmul.f32 -1.442695, %v509_v34  ;;  %v969_v41 = vmul.f32 -1.442695, %v532_v36 }
 0x4e7   :  { %1035 = vpow2.f32 %v968_v37 }
 0x4e8   :  { %1037 = vpow2.f32 %v969_v41 }
 0x4ed   :  { %v1036_v42 = vpop.eup %1035 }
 0x4ee   :  { %v1038_v43 = vpop.eup %1037  ;;  %v543_v44 = vadd.f32 1.0, %v1036_v42 }
 0x4ef   :  { %v544_v45 = vadd.f32 1.0, %v1038_v43 }
 0x4f0   :  { %1039 = vrcp.f32 %v543_v44  ;;  %v556_v52 = vand.u32 2147483648, %v543_v44  ;;  %v554_v54 = vand.u32 2147483647, %v543_v44  ;;  %vm550_vm8 = vweird.f32 %v543_v44 }
 0x4f1   :  { %1041 = vrcp.f32 %v544_v45  ;;  %v571_v55 = vand.u32 2147483648, %v544_v45  ;;  %v569_v57 = vand.u32 2147483647, %v544_v45  ;;  %vm565_vm10 = vweird.f32 %v544_v45 }
 0x4f2   :  { %1043 = vtanh.f32 %v506_v32  ;;  %v557_v59 = vor.u32 1.1754944e-38, %v556_v52  ;;  %vm555_vm11 = vcmp.eq.f32.partialorder %v554_v54, 8.507059e+37 }
 0x4f3   :  { %1045 = vtanh.f32 %v529_v33  ;;  %v572_v63 = vor.u32 1.1754944e-38, %v571_v55  ;;  %vm570_vm13 = vcmp.eq.f32.partialorder %v569_v57, 8.507059e+37 }
 0x4f6   :  { %v1040_v46 = vpop.eup %1039 }
 0x4f7   :  { %v1042_v47 = vpop.eup %1041  ;;  %v546_v48 = vmul.f32 %v1040_v46, %v543_v44  ;;  %vm551_vm6 = vweird.f32 %v1040_v46 }
 0x4f8   :  { %v561_v50 = vmul.f32 %v1042_v47, %v544_v45  ;;  %vm566_vm7 = vweird.f32 %v1042_v47  ;;  %vm552_vm9 = vmor %vm550_vm8, %vm551_vm6  ;;  %v1044_v61 = vpop.eup %1043  ;;  %vm1467_vm6 = vcmp.lt.s32.totalorder %v1142_v13, 126 }
 0x4f9   :  { %v547_v49 = vsub.f32 1.0, %v546_v48  ;;  %vm567_vm12 = vmor %vm565_vm10, %vm566_vm7  ;;  %v1046_v0 = vpop.eup %1045  ;;  %vm1468_vm7 = vcmp.lt.s32.totalorder %v1139_v8, 2  ;;  %vm1471_vm10 = vcmp.ge.s32.totalorder %v1142_v13, 2 }
 0x4fa   :  { %v562_v51 = vsub.f32 1.0, %v561_v50  ;;  %vm1469_vm8 = vmmov %vm1468_vm7 }
 0x4fb   :  { %v548_v53 = vmul.f32 %v1040_v46, %v547_v49 }
 0x4fc   :  { %v563_v56 = vmul.f32 %v1042_v47, %v562_v51 }
 0x4fd   :  { %v549_v58 = vadd.f32 %v1040_v46, %v548_v53 }
 0x4fe   :  { %v564_v60 = vadd.f32 %v1042_v47, %v563_v56 }
 0x4ff   :  { %v553_v62 = vsel %vm552_vm9, %v1040_v46, %v549_v58  ;;  %vm1470_vm9 = vcmp.ge.s32.totalorder %v1139_v8, 2 }
 0x500   :  { %v558_v1 = vsel %vm555_vm11, %v557_v59, %v553_v62  ;;  %v568_v2 = vsel %vm567_vm12, %v1042_v47, %v564_v60 }
 0x501   :  { %v575_v3 = vmul.f32 %v1044_v61, %v558_v1  ;;  %v573_v4 = vsel %vm570_vm13, %v572_v63, %v568_v2  ;;  %v471_v1 = vadd.f32 %v1356_v6, %v1286_v39  ;;  %v472_v2 = vadd.f32 %v1358_v9, %v1288_v40 }
 0x502   :  { %v576_v5 = vmul.f32 %v1046_v0, %v573_v4 }
 0x503   :  { %592 = vmatpush.msra.mxu0 %v575_v3 }
 0x504   :  { %615 = vmatpush.msra.mxu1 %v576_v5  ;;  %970 = vmatmul.msk.f32.vlgmr.msra.gmra.mxu0 %vm234_vm14, %v1216_v22 }
 0x505   :  { %972 = vmatmul.msk.f32.vlgmr.msra.gmra.mxu1 %vm234_vm14, %v1216_v22 }
 0x50c   :  { %971 = vmatmul.msk.f32.gmra.mxu0 %vm234_vm14, %v1239_v28 }
 0x50d   :  { %973 = vmatmul.msk.f32.gmra.mxu1 %vm234_vm14, %v1239_v28 }
 0x581   :  { %v594_v10 = vpop.f32.mrf.mxu0 }
 0x582   :  { %v623_v11 = vadd.f32 %v594_v10, %v1309_v19  ;;  %v617_v12 = vpop.f32.mrf.mxu1 }
 0x583   :  { %v624_v14 = vadd.f32 %v617_v12, %v1312_v21 }
 0x584   :  { %627 = vrot.lane.b32.xlu1 %v623_v11, %s1090_s7  ;;  %635 = vrot.lane.b32.xlu2 %v623_v11, %s1091_s8 }
 0x585   :  { %637 = vrot.lane.b32.xlu0 %v624_v14, %s1091_s8 }
 0x589   :  { %v597_v61 = vpop.f32.mrf.mxu0 }
 0x58a   :  { %v620_v62 = vpop.f32.mrf.mxu1  ;;  %v625_v3 = vadd.f32 %v597_v61, %v471_v1 }
 0x58b   :  { %v626_v4 = vadd.f32 %v620_v62, %v472_v2 }
 0x58c   :  { %629 = vrot.lane.b32.xlu2 %v624_v14, %s1090_s7 }
 0x5de   :  { %v636_v22 = vpop.permute.xlu2 %635 }
 0x5e6   :  { %v630_v20 = vpop.permute.xlu2 %629 }
 0x5f6   :  { %v628_v19 = vpop.permute.xlu1 %627 }
 0x5f7   :  { %v638_v28 = vpop.permute.xlu0 %637  ;;  %v631_v21 = vsel %vm1468_vm7, %v628_v19, %v630_v20  ;;  %v632_v23 = vsel %vm1469_vm8, %v630_v20, %v628_v19 }
 0x5f8   :  { %v639_v16 = vsel %vm57_vm15, %v636_v22, %v638_v28  ;;  %v640_v18 = vsel %vm57_vm15, %v638_v28, %v636_v22  ;;  %v779_v28 = vld [vmem:[%s1460_s4] sm:$0xff] }
 0x5f9   :  { %974 = vmatpush.msk.msrb.mxu2 %vm57_vm15, %v639_v16  ;;  %978 = vmatpush.msk.msrb.mxu3 %vm1467_vm6, %v640_v18 }
 0x5fb   :  { %657 = vmatpush.msrb.mxu2 %v623_v11  ;;  %680 = vmatpush.msrb.mxu3 %v624_v14 }
 0x5fd   :  { %975 = vmatpush.msk.msrb.mxu2 %vm1470_vm9, %v632_v23  ;;  %979 = vmatpush.msk.msrb.mxu3 %vm1471_vm10, %v631_v21 }
 0x5fe   :  { %976 = vmatmul.msk.f32.vlgmr.msrb.gmra.mxu2 %vm139_vm5, %v1263_v35  ;;  %980 = vmatmul.msk.f32.vlgmr.msrb.gmra.mxu3 %vm139_vm5, %v1263_v35 }
 0x606   :  { %977 = vmatmul.msk.f32.gmra.mxu2 %vm139_vm5, %v1280_v38  ;;  %981 = vmatmul.msk.f32.gmra.mxu3 %vm139_vm5, %v1280_v38 }
 0x681   :  { %v660_v24 = vpop.f32.mrf.mxu2  ;;  %v683_v25 = vpop.f32.mrf.mxu3 }
 0x689   :  { %v663_v26 = vpop.f32.mrf.mxu2  ;;  %v686_v27 = vpop.f32.mrf.mxu3 }
 0x68a   :  { %v982_v29 = vmul.f32 -1.442695, %v663_v26  ;;  %v983_v30 = vmul.f32 -1.442695, %v686_v27 }
 0x68c   :  { %1047 = vpow2.f32 %v982_v29 }
 0x68d   :  { %1049 = vpow2.f32 %v983_v30 }
 0x692   :  { %v1048_v31 = vpop.eup %1047 }
 0x693   :  { %v1050_v32 = vpop.eup %1049  ;;  %v697_v33 = vadd.f32 1.0, %v1048_v31  ;;  %v841_v31 = vld [vmem:[%s1461_s5] sm:$0x1] }
 0x694   :  { %v698_v34 = vadd.f32 1.0, %v1050_v32 }
 0x695   :  { %1051 = vrcp.f32 %v697_v33  ;;  %v710_v43 = vand.u32 2147483648, %v697_v33  ;;  %v708_v45 = vand.u32 2147483647, %v697_v33  ;;  %vm704_vm12 = vweird.f32 %v697_v33 }
 0x696   :  { %1053 = vrcp.f32 %v698_v34  ;;  %v725_v46 = vand.u32 2147483648, %v698_v34  ;;  %v723_v48 = vand.u32 2147483647, %v698_v34  ;;  %vm719_vm6 = vweird.f32 %v698_v34 }
 0x697   :  { %1055 = vtanh.f32 %v660_v24  ;;  %v711_v49 = vor.u32 1.1754944e-38, %v710_v43  ;;  %vm709_vm7 = vcmp.eq.f32.partialorder %v708_v45, 8.507059e+37 }
 0x698   :  { %1057 = vtanh.f32 %v683_v25  ;;  %v726_v54 = vor.u32 1.1754944e-38, %v725_v46  ;;  %vm724_vm9 = vcmp.eq.f32.partialorder %v723_v48, 8.507059e+37 }
 0x69b   :  { %v1052_v35 = vpop.eup %1051 }
 0x69c   :  { %v1054_v36 = vpop.eup %1053  ;;  %v700_v37 = vmul.f32 %v1052_v35, %v697_v33  ;;  %vm705_vm15 = vweird.f32 %v1052_v35 }
 0x69d   :  { %v715_v41 = vmul.f32 %v1054_v36, %v698_v34  ;;  %vm720_vm11 = vweird.f32 %v1054_v36  ;;  %vm706_vm13 = vmor %vm704_vm12, %vm705_vm15  ;;  %v1056_v52 = vpop.eup %1055 }
 0x69e   :  { %v701_v38 = vsub.f32 1.0, %v700_v37  ;;  %vm721_vm8 = vmor %vm719_vm6, %vm720_vm11  ;;  %v1058_v55 = vpop.eup %1057 }
 0x69f   :  { %v716_v42 = vsub.f32 1.0, %v715_v41 }
 0x6a0   :  { %v702_v44 = vmul.f32 %v1052_v35, %v701_v38 }
 0x6a1   :  { %v717_v47 = vmul.f32 %v1054_v36, %v716_v42 }
 0x6a2   :  { %v703_v50 = vadd.f32 %v1052_v35, %v702_v44 }
 0x6a3   :  { %v718_v51 = vadd.f32 %v1054_v36, %v717_v47 }
 0x6a4   :  { %v707_v53 = vsel %vm706_vm13, %v1052_v35, %v703_v50 }
 0x6a5   :  { %v712_v56 = vsel %vm709_vm7, %v711_v49, %v707_v53  ;;  %v722_v57 = vsel %vm721_vm8, %v1054_v36, %v718_v51 }
 0x6a6   :  { %v729_v58 = vmul.f32 %v1056_v52, %v712_v56  ;;  %v727_v59 = vsel %vm724_vm9, %v726_v54, %v722_v57 }
 0x6a7   :  { %v730_v60 = vmul.f32 %v1058_v55, %v727_v59 }
 0x6a8   :  { %746 = vmatpush.msrb.mxu0 %v729_v58 }
 0x6a9   :  { %768 = vmatpush.msrb.mxu1 %v730_v60  ;;  %984 = vmatmul.msk.f32.vlgmr.msrb.gmra.mxu0 %vm234_vm14, %v1293_v15 }
 0x6aa   :  { %986 = vmatmul.msk.f32.vlgmr.msrb.gmra.mxu1 %vm234_vm14, %v1293_v15 }
 0x6b1   :  { %985 = vmatmul.msk.f32.gmra.mxu0 %vm234_vm14, %v1302_v17 }
 0x6b2   :  { %987 = vmatmul.msk.f32.gmra.mxu1 %vm234_vm14, %v1302_v17 }
 0x726   :  { %v748_v63 = vpop.f32.mrf.mxu0 }
 0x727   :  { %v770_v0 = vpop.f32.mrf.mxu1 }
 0x72e   :  { %v750_v5 = vpop.f32.mrf.mxu0 }
 0x72f   :  { %v775_v15 = vadd.f32 %v750_v5, %v625_v3  ;;  %v772_v10 = vpop.f32.mrf.mxu1 }
 0x730   :  { %v776_v11 = vadd.f32 %v772_v10, %v626_v4 }
 0x731   :  { %v777_v12 = vmax.f32 %v775_v15, 0.0 }
 0x732   :  { %v778_v14 = vmax.f32 %v776_v11, 0.0 }
 0x733   :  { %780 = vrot.lane.b32.xlu2 %v777_v12, %s1088_s24  ;;  %788 = vrot.lane.b32.xlu0 %v777_v12, %s1087_s23 }
 0x734   :  { %790 = vrot.lane.b32.xlu1 %v778_v14, %s1087_s23 }
 0x73b   :  { %782 = vrot.lane.b32.xlu0 %v778_v14, %s1088_s24 }
 0x78d   :  { %v781_v9 = vpop.permute.xlu2 %780 }
 0x7a5   :  { %v789_v39 = vpop.permute.xlu0 %788 }
 0x7a6   :  { %v791_v17 = vpop.permute.xlu1 %790 }
 0x7a7   :  { %v792_v40 = vsel %vm53_vm0, %v789_v39, %v791_v17  ;;  %v793_v6 = vsel %vm53_vm0, %v791_v17, %v789_v39 }
 0x7a8   :  { %988 = vmatpush.msk.msra.mxu2 %vm53_vm0, %v792_v40  ;;  %991 = vmatpush.msk.msra.mxu3 %vm54_vm4, %v793_v6 }
 0x7aa   :  { %813 = vmatpush.msra.mxu2 %v777_v12  ;;  %833 = vmatpush.msra.mxu3 %v778_v14 }
 0x7ad   :  { %v783_v22 = vpop.permute.xlu0 %782 }
 0x7ae   :  { %v784_v16 = vsel %vm70_vm1, %v781_v9, %v783_v22  ;;  %v785_v18 = vsel %vm70_vm1, %v783_v22, %v781_v9 }
 0x7af   :  { %989 = vmatpush.msk.msra.mxu2 %vm51_vm2, %v785_v18  ;;  %992 = vmatpush.msk.msra.mxu3 %vm52_vm3, %v784_v16 }
 0x7b0   :  { %990 = vmatmul.msk.f32.vlgmr.msra.gmra.mxu2 %vm139_vm5, %v779_v28  ;;  %993 = vmatmul.msk.f32.vlgmr.msra.gmra.mxu3 %vm139_vm5, %v779_v28 }
 0x833   :  { %v816_v19 = vpop.f32.mrf.mxu2  ;;  %v836_v20 = vpop.f32.mrf.mxu3 }
 0x834   :  { %v839_v21 = vmax.f32 %v816_v19, 0.0  ;;  %v840_v23 = vmax.f32 %v836_v20, 0.0 }
 0x836   :  { %850 = vrot.lane.b32.xlu1 %v839_v21, %s1087_s23  ;;  %842 = vrot.lane.b32.xlu0 %v839_v21, %s1088_s24 }
 0x837   :  { %852 = vrot.lane.b32.xlu2 %v840_v23, %s1087_s23  ;;  %s919_s23 = sshll.u32 %s1462_s6, 4  ;;  %s920_s23 = int_to_ptr.hbm [resolvable:$true] %s919_s23 }
 0x83e   :  { %844 = vrot.lane.b32.xlu1 %v840_v23, %s1088_s24 }
 0x891   :  { %v853_v24 = vpop.permute.xlu2 %852 }
 0x8a8   :  { %v851_v25 = vpop.permute.xlu1 %850  ;;  %v843_v29 = vpop.permute.xlu0 %842 }
 0x8a9   :  { %v854_v26 = vsel %vm53_vm0, %v851_v25, %v853_v24  ;;  %v855_v27 = vsel %vm53_vm0, %v853_v24, %v851_v25 }
 0x8aa   :  { %994 = vmatpush.msk.msra.mxu0 %vm53_vm0, %v854_v26  ;;  %997 = vmatpush.msk.msra.mxu1 %vm54_vm4, %v855_v27  ;;  %vm904_vm0 = vcmask 1040384  }
 0x8ac   :  { %875 = vmatpush.msra.mxu0 %v839_v21  ;;  %895 = vmatpush.msra.mxu1 %v840_v23 }
 0x8b0   :  { %v845_v30 = vpop.permute.xlu1 %844 }
 0x8b1   :  { %v846_v32 = vsel %vm70_vm1, %v843_v29, %v845_v30  ;;  %v847_v33 = vsel %vm70_vm1, %v845_v30, %v843_v29  ;;  %vm909_vm1 = vcmp.lt.s32.totalorder %v24_v7, 256 }
 0x8b2   :  { %995 = vmatpush.msk.msra.mxu0 %vm51_vm2, %v847_v33  ;;  %998 = vmatpush.msk.msra.mxu1 %vm52_vm3, %v846_v32 }
 0x8b3   :  { %999 = vmatmul.msk.f32.vlgmr.msra.gmra.mxu1 %vm139_vm5, %v841_v31  ;;  %996 = vmatmul.msk.f32.vlgmr.msra.gmra.mxu0 %vm139_vm5, %v841_v31 }
 0x930   :  { %v898_v34 = vpop.f32.mrf.mxu1  ;;  %v878_v35 = vpop.f32.mrf.mxu0 }
 0x931   :  { %v903_v36 = vrot.slane %v898_v34, 7 }
 0x933   :  { %v905_v8 = vsel %vm904_vm0, %v878_v35, %v903_v36 }
 0x934   :  { %911 = vst.msk [vmem:[#allocation2] sm:$0x3] %vm909_vm1, %v905_v8 }
 0x935   :  { %922 = dma.vmem_to_hbm [thread:$0]  %s918_s21, 32, %s920_s23, [#allocation3]  }
 0x936   :  { %1083 = dma.done.wait [#allocation3], 32  }
 0x937   :  { %1084 = vsyncadd [#allocation3], 4294967264 }
 0x938   :  { %927 = vsyncpa [#allocation3], 1 }

</bundles_post_ra>
